<compile_context>
chip_gen: v7x
topology: tpu7x:2x2x1
jax: 0.10.0
libtpu: 0.0.40
codegen_flags: <defaults>
</compile_context>

<pallas_src>
import jax
import jax.numpy as jnp
from jax import lax
from jax.experimental import pallas as pl
from jax.experimental.pallas import tpu as pltpu


def _round_up(x, m):
    return ((x + m - 1) // m) * m


def _choose_pack(obs_dim, h1, h2, max_pack=8):
    """Smallest row-packing factor that makes every matmul dim lane-dense."""
    for p in range(1, max_pack + 1):
        if (obs_dim * p) % 128 == 0 and (h1 * p) % 128 == 0 and (h2 * p) % 128 == 0:
            return p
    return 1


def _block_diag(w, n):
    """Block-diagonal matrix with n copies of w on the diagonal."""
    if n == 1:
        return w
    d_in, d_out = w.shape
    out = jnp.zeros((n * d_in, n * d_out), dtype=w.dtype)
    for i in range(n):
        out = out.at[i * d_in:(i + 1) * d_in, i * d_out:(i + 1) * d_out].set(w)
    return out


def _make_kernel(chunk, num_chunks):
    """Fused 2-layer MLP kernel for one (bm, k_in) batch tile.

    chunk / num_chunks are static Python ints: the bm-row VMEM tile is
    processed in `num_chunks` sub-chunks of `chunk` rows each (bm = chunk *
    num_chunks), keeping live vreg values small while the DMA tile stays large.
    """

    def kernel(x_ref, w1_ref, b1_ref, w2_ref, b2_ref, o_ref):
        w1 = w1_ref[...]
        w2 = w2_ref[...]
        h1p = w1.shape[1]
        h2p = w2.shape[1]
        # Hoist the f32 bias broadcasts out of the chunk loop (JAX does not CSE
        # broadcast_in_dim, so broadcasting inside `body` re-emits it per iter).
        b1 = jnp.broadcast_to(b1_ref[...].astype(jnp.float32), (chunk, h1p))
        b2 = jnp.broadcast_to(b2_ref[...].astype(jnp.float32), (chunk, h2p))

        def compute(x):
            h = jnp.dot(x, w1, preferred_element_type=jnp.float32)
            h = jnp.maximum(h + b1, 0.0)
            # Cast the hidden activation to the weight dtype so a bf16 model
            # uses the native bf16 MXU path for the second GEMM (no-op for f32).
            y = jnp.dot(h.astype(w2.dtype), w2, preferred_element_type=jnp.float32)
            y = jnp.maximum(y + b2, 0.0)
            return y.astype(o_ref.dtype)   # final cast is the LAST op

        if num_chunks == 1:
            o_ref[...] = compute(x_ref[...])
        else:
            def body(c, carry):
                start = pl.multiple_of(c * chunk, chunk)
                o_ref[pl.ds(start, chunk), :] = compute(
                    x_ref[pl.ds(start, chunk), :])
                return carry

            # Short static trip-count: unroll so the whole tile is visible to
            # the LLO scheduler.
            lax.fori_loop(0, num_chunks, body, 0, unroll=True)

    return kernel


def mlp_obs_encoder(obs, w1, b1, w2, b2, *, block_rows=2048, inner_chunk=256):
    """Fused MLPObsEncoder forward.  obs: [B, obs_dim] -> [B, h2].

    block_rows is in *packed* rows (one packed row = `pack` obs rows); the
    default 2048 packed rows = 8192 obs rows.  On v7x feel free to pass
    block_rows=4096 (HBM is ~3.2 TB/s, VMEM is not the binding constraint).
    """
    B, obs_dim = obs.shape
    h1 = w1.shape[1]
    h2 = w2.shape[1]
    assert w1.shape == (obs_dim, h1)
    assert w2.shape == (h1, h2)
    assert b1.shape == (1, h1) and b2.shape == (1, h2)

    # ---- lane-dense repack -------------------------------------------------
    pack = _choose_pack(obs_dim, h1, h2)
    Bp = _round_up(B, pack)
    # Only pad up to (pack-1) rows when B is not a multiple of pack; there is
    # no padding to tile multiples (ragged boundary block handled by Pallas).
    obs_p = jnp.pad(obs, ((0, Bp - B), (0, 0))) if Bp != B else obs
    rows = Bp // pack
    k_in, k_mid, k_out = obs_dim * pack, h1 * pack, h2 * pack

    x = obs_p.reshape(rows, k_in)            # free row-major reshape
    w1p = _block_diag(w1, pack)              # (k_in,  k_mid)
    w2p = _block_diag(w2, pack)              # (k_mid, k_out)
    b1p = jnp.tile(b1, (1, pack)) if pack > 1 else b1
    b2p = jnp.tile(b2, (1, pack)) if pack > 1 else b2

    # ---- batch tiling --------------------------------------------------------
    # Large tiles amortize the ~0.35us per-grid-step overhead; no ceil(B/2) cap
    # (v5e/v6e have 1 TC; v7x megacore still gets >=2 steps for large batches).
    bm = min(block_rows, _round_up(rows, 8))
    if bm > inner_chunk:
        bm = _round_up(bm, inner_chunk)
        chunk, num_chunks = inner_chunk, bm // inner_chunk
    else:
        chunk, num_chunks = bm, 1

    grid_m = pl.cdiv(rows, bm)   # ragged last block: writes masked by Pallas

    act_itemsize = jnp.dtype(obs.dtype).itemsize
    w_itemsize = jnp.dtype(w1.dtype).itemsize
    cost = pl.CostEstimate(
        flops=2 * Bp * (obs_dim * h1 + h1 * h2),
        transcendentals=0,
        bytes_accessed=int(
            rows * (k_in + k_out) * act_itemsize
            + (w1p.size + w2p.size + b1p.size + b2p.size) * w_itemsize),
    )

    out = pl.pallas_call(
        _make_kernel(chunk, num_chunks),
        out_shape=jax.ShapeDtypeStruct((rows, k_out), obs.dtype),
        grid_spec=pl.GridSpec(
            grid=(grid_m,),
            in_specs=[
                # batch-tiled activation stream (the only pipelined input)
                pl.BlockSpec((bm, k_in), lambda i: (i, 0)),
                # weights / biases: full arrays, constant index_map -> stay
                # resident in VMEM across grid steps (no per-step re-DMA)
                pl.BlockSpec((k_in, k_mid), lambda i: (0, 0)),
                pl.BlockSpec((1, k_mid), lambda i: (0, 0)),
                pl.BlockSpec((k_mid, k_out), lambda i: (0, 0)),
                pl.BlockSpec((1, k_out), lambda i: (0, 0)),
            ],
            out_specs=pl.BlockSpec((bm, k_out), lambda i: (i, 0)),
        ),
        compiler_params=pltpu.CompilerParams(
            dimension_semantics=("parallel",),
            # ~6 MB double-buffered activation tiles + <0.5 MB resident weights
            # fit comfortably under 32 MiB on v5e/v6e/v7x.
            vmem_limit_bytes=32 * 1024 * 1024,
        ),
        cost_estimate=cost,
    )(x, w1p, b1p, w2p, b2p)

    out = out.reshape(Bp, h2)                 # free row-major view back to [Bp, h2]
    return out[:B] if Bp != B else out


def init_params(key, obs_dim, hidden_dims, dtype=jnp.float32):
    """Deterministic synthetic init (biases zero, as in metamorph's init_)."""
    params = []
    dims = [obs_dim] + list(hidden_dims)
    for d_in, d_out in zip(dims[:-1], dims[1:]):
        key, sub = jax.random.split(key)
        w = (jax.random.normal(sub, (d_in, d_out), dtype=jnp.float32)
             * (1.0 / jnp.sqrt(d_in))).astype(dtype)
        b = jnp.zeros((1, d_out), dtype=dtype)
        params.append((w, b))
    return params


def reference_forward(obs, params):
    """Pure-JAX reference of the PyTorch module (f32 math)."""
    h = obs.astype(jnp.float32)
    for w, b in params:
        h = jnp.maximum(h @ w.astype(jnp.float32) + b.astype(jnp.float32), 0.0)
    return h


if __name__ == "__main__":
    # Shapes consistent with the module:
    #   obs_dim = 32 (e.g. hfield obs), EXT_HIDDEN_DIMS = [64, 64] (default).
    obs_dim = 32
    ext_hidden_dims = [64, 64]

    key = jax.random.PRNGKey(0)
    key, k_obs = jax.random.split(key)
    (w1, b1), (w2, b2) = init_params(key, obs_dim, ext_hidden_dims)
    params = [(w1, b1), (w2, b2)]

    # --- f32, batch not a tile multiple (ragged boundary block, no pad) ---
    batch = 200
    obs = jax.random.normal(k_obs, (batch, obs_dim), dtype=jnp.float32)
    ref = reference_forward(obs, params)
    out = jax.block_until_ready(mlp_obs_encoder(obs, w1, b1, w2, b2))
    assert out.shape == (batch, ext_hidden_dims[-1])
    assert jnp.allclose(out, ref, atol=1e-5, rtol=1e-5), "f32 mismatch vs reference"

    # --- batch not a multiple of the packing factor (small pack-pad path) ---
    obs_odd = obs[:203] if batch >= 203 else obs
    batch_odd = 203
    key, k_odd = jax.random.split(key)
    obs_odd = jax.random.normal(k_odd, (batch_odd, obs_dim), dtype=jnp.float32)
    ref_odd = reference_forward(obs_odd, params)
    out_odd = jax.block_until_ready(mlp_obs_encoder(obs_odd, w1, b1, w2, b2))
    assert out_odd.shape == (batch_odd, ext_hidden_dims[-1])
    assert jnp.allclose(out_odd, ref_odd, atol=1e-5, rtol=1e-5), "odd-batch mismatch"

    # --- tiny batch (single ragged block) ---
    out_small = jax.block_until_ready(mlp_obs_encoder(obs[:16], w1, b1, w2, b2))
    assert jnp.allclose(out_small, ref[:16], atol=1e-5, rtol=1e-5), "small-batch mismatch"

    # --- larger batch: exercises the unrolled inner-chunk loop (single tile) ---
    key, k_big = jax.random.split(key)
    obs_big = jax.random.normal(k_big, (4096, obs_dim), dtype=jnp.float32)
    ref_big = reference_forward(obs_big, params)
    out_big = jax.block_until_ready(mlp_obs_encoder(obs_big, w1, b1, w2, b2))
    assert jnp.allclose(out_big, ref_big, atol=1e-5, rtol=1e-5), "big-batch mismatch"

    # --- same data, small tile: exercises the multi-step pipelined grid ---
    out_grid = jax.block_until_ready(
        mlp_obs_encoder(obs_big, w1, b1, w2, b2, block_rows=256))
    assert jnp.allclose(out_grid, ref_big, atol=1e-5, rtol=1e-5), "multi-grid mismatch"

    # --- bf16 activations + weights (halved HBM traffic, f32 accumulate) ---
    obs_bf16 = obs.astype(jnp.bfloat16)
    p_bf16 = [(w1.astype(jnp.bfloat16), b1.astype(jnp.bfloat16)),
              (w2.astype(jnp.bfloat16), b2.astype(jnp.bfloat16))]
    out_bf16 = jax.block_until_ready(
        mlp_obs_encoder(obs_bf16, p_bf16[0][0], p_bf16[0][1],
                        p_bf16[1][0], p_bf16[1][1]))
    ref_bf16 = reference_forward(obs_bf16, p_bf16)
    assert out_bf16.dtype == jnp.bfloat16
    assert jnp.allclose(out_bf16.astype(jnp.float32), ref_bf16,
                        atol=1e-1, rtol=1e-1), "bf16 mismatch vs reference"

    print("KERNEL_OK")
</pallas_src>

<mosaic_0001>
module attributes {stable_mosaic.version = 11 : i64} {
  func.func @kernel(%arg0: i32, %arg1: memref<56x128xf32, #tpu.memory_space<vmem>>, %arg2: memref<128x256xf32, #tpu.memory_space<vmem>>, %arg3: memref<1x256xf32, #tpu.memory_space<vmem>>, %arg4: memref<256x256xf32, #tpu.memory_space<vmem>>, %arg5: memref<1x256xf32, #tpu.memory_space<vmem>>, %arg6: memref<56x256xf32, #tpu.memory_space<vmem>>) attributes {dimension_semantics = [#tpu.dimension_semantics<parallel>], iteration_bounds = array<i64: 1>, scalar_prefetch = 0 : i64, scratch_operands = 0 : i64, tpu.core_type = #tpu.core_type<tc>, window_params = [{transform_indices = @transform_0, window_bounds = array<i64: 56, 128>}, {pipeline_mode = #tpu.pipeline_mode<synchronous>, transform_indices = @transform_1, window_bounds = array<i64: 128, 256>}, {pipeline_mode = #tpu.pipeline_mode<synchronous>, transform_indices = @transform_2, window_bounds = array<i64: 1, 256>}, {pipeline_mode = #tpu.pipeline_mode<synchronous>, transform_indices = @transform_3, window_bounds = array<i64: 256, 256>}, {pipeline_mode = #tpu.pipeline_mode<synchronous>, transform_indices = @transform_4, window_bounds = array<i64: 1, 256>}, {transform_indices = @transform_5, window_bounds = array<i64: 56, 256>}]} {
    %c0 = arith.constant 0 : index
    %c0_0 = arith.constant 0 : index
    %0 = vector.load %arg2[%c0, %c0_0] : memref<128x256xf32, #tpu.memory_space<vmem>>, vector<128x256xf32>
    %c0_1 = arith.constant 0 : index
    %c0_2 = arith.constant 0 : index
    %1 = vector.load %arg4[%c0_1, %c0_2] : memref<256x256xf32, #tpu.memory_space<vmem>>, vector<256x256xf32>
    %c0_3 = arith.constant 0 : index
    %c0_4 = arith.constant 0 : index
    %2 = vector.load %arg3[%c0_3, %c0_4] : memref<1x256xf32, #tpu.memory_space<vmem>>, vector<1x256xf32>
    %3 = vector.shape_cast %2 : vector<1x256xf32> to vector<1x256xf32>
    %4 = vector.broadcast %3 : vector<1x256xf32> to vector<56x256xf32>
    %c0_5 = arith.constant 0 : index
    %c0_6 = arith.constant 0 : index
    %5 = vector.load %arg5[%c0_5, %c0_6] : memref<1x256xf32, #tpu.memory_space<vmem>>, vector<1x256xf32>
    %6 = vector.shape_cast %5 : vector<1x256xf32> to vector<1x256xf32>
    %7 = vector.broadcast %6 : vector<1x256xf32> to vector<56x256xf32>
    %c0_7 = arith.constant 0 : index
    %c0_8 = arith.constant 0 : index
    %8 = vector.load %arg1[%c0_7, %c0_8] : memref<56x128xf32, #tpu.memory_space<vmem>>, vector<56x128xf32>
    %cst = arith.constant dense<0.000000e+00> : vector<56x256xf32>
    %9 = tpu.matmul %8, %0, %cst {dimension_numbers = #tpu.dot_dimension_numbers<[1], [0], [0], [1], [0, 0, 1, 1], [], []>} : vector<56x128xf32>, vector<128x256xf32>, vector<56x256xf32> -> vector<56x256xf32>
    %10 = arith.addf %9, %4 : vector<56x256xf32>
    %cst_9 = arith.constant 0.000000e+00 : f32
    %11 = vector.broadcast %cst_9 : f32 to vector<56x256xf32>
    %12 = arith.maximumf %10, %11 : vector<56x256xf32>
    %cst_10 = arith.constant dense<0.000000e+00> : vector<56x256xf32>
    %13 = tpu.matmul %12, %1, %cst_10 {dimension_numbers = #tpu.dot_dimension_numbers<[1], [0], [0], [1], [0, 0, 1, 1], [], []>} : vector<56x256xf32>, vector<256x256xf32>, vector<56x256xf32> -> vector<56x256xf32>
    %14 = arith.addf %13, %7 : vector<56x256xf32>
    %cst_11 = arith.constant 0.000000e+00 : f32
    %15 = vector.broadcast %cst_11 : f32 to vector<56x256xf32>
    %16 = arith.maximumf %14, %15 : vector<56x256xf32>
    %c0_12 = arith.constant 0 : index
    %c0_13 = arith.constant 0 : index
    %17 = vector.load %arg6[%c0_12, %c0_13] : memref<56x256xf32, #tpu.memory_space<vmem>>, vector<56x256xf32>
    tpu.vector_store %arg6[%c0_12, %c0_13], %16 {strides = array<i32>} : memref<56x256xf32, #tpu.memory_space<vmem>>, vector<56x256xf32>,
    return
  }
  func.func @transform_0(%arg0: i32) -> (i32, i32) {
    %c0_i32 = arith.constant 0 : i32
    %c0_i32_0 = arith.constant 0 : i32
    return %arg0, %c0_i32 : i32, i32
  }
  func.func @transform_1(%arg0: i32) -> (i32, i32) {
    %c0_i32 = arith.constant 0 : i32
    %c0_i32_0 = arith.constant 0 : i32
    %c0_i32_1 = arith.constant 0 : i32
    return %c0_i32, %c0_i32_0 : i32, i32
  }
  func.func @transform_2(%arg0: i32) -> (i32, i32) {
    %c0_i32 = arith.constant 0 : i32
    %c0_i32_0 = arith.constant 0 : i32
    %c0_i32_1 = arith.constant 0 : i32
    return %c0_i32, %c0_i32_0 : i32, i32
  }
  func.func @transform_3(%arg0: i32) -> (i32, i32) {
    %c0_i32 = arith.constant 0 : i32
    %c0_i32_0 = arith.constant 0 : i32
    %c0_i32_1 = arith.constant 0 : i32
    return %c0_i32, %c0_i32_0 : i32, i32
  }
  func.func @transform_4(%arg0: i32) -> (i32, i32) {
    %c0_i32 = arith.constant 0 : i32
    %c0_i32_0 = arith.constant 0 : i32
    %c0_i32_1 = arith.constant 0 : i32
    return %c0_i32, %c0_i32_0 : i32, i32
  }
  func.func @transform_5(%arg0: i32) -> (i32, i32) {
    %c0_i32 = arith.constant 0 : i32
    %c0_i32_0 = arith.constant 0 : i32
    return %arg0, %c0_i32 : i32, i32
  }
}

</mosaic_0001>

<bundles_post_ra>
// kernel: tpu_custom_call.1
= control target key start
LH: loop header
LB: loop body
LE: loop exit
PB: predicated region body
PF: predicated region fallthrough
CT: control target
= control target key end

     0   :  { %10 = vsyncpa [#allocation3], 0  ;;  %s775_s0 = inlined_call_operand.hbm [shape: f32[50,128], index: 0, kind: input, shape index: {}]   ;;  %s776_s1 = inlined_call_operand.hbm [shape: f32[128,256], index: 1, kind: input, shape index: {}]   ;;  %s777_s2 = inlined_call_operand.vmem [shape: f32[1,256], index: 2, kind: input, shape index: {}]   ;;  %s778_s3 = inlined_call_operand.hbm [shape: f32[256,256], index: 3, kind: input, shape index: {}]   ;;  %s779_s4 = inlined_call_operand.vmem [shape: f32[1,256], index: 4, kind: input, shape index: {}]   ;;  %s780_s5 = inlined_call_operand.hbm [shape: f32[50,256], index: 5, kind: output, shape index: {}]  }
   0x1   :  { %11 = vsyncpa [#allocation6], 0 }
   0x2   :  { %12 = vsyncpa [#allocation4], 0  ;;  %s662_s18 = smov [#allocation5]   ;;  %s568_s22 = scalar_lea.hbm %s776_s1, 4096 }
   0x3   :  { %s30_s19 = sshll.u32 %s662_s18, 4  ;;  %p569_p0 = scmp.ne.s32.totalorder %s776_s1, %s568_s22  ;;  %s31_s19 = int_to_ptr.vmem [resolvable:$true] %s30_s19 }
   0x4   :  { %p572_p1 = scmp.lt.u32.totalorder %s568_s22, %s776_s1 }
   0x6   :  { %p574_p2 = pnand %p572_p1, %p569_p0 }
   0x8   :  { %577 = shalt.err (!%p574_p2)
}
   0x9   :  { %s578_s27 = scalar_lea.vmem %s31_s19, 4096  ;;  %p583_p4 = scmp.lt.s32.totalorder %s31_s19, %s31_s19 }
   0xa   :  { %p579_p3 = scmp.ne.s32.totalorder %s31_s19, %s578_s27  ;;  %p584_p5 = scmp.lt.s32.totalorder %s578_s27, %s578_s27 }
   0xc   :  { %p585_p6 = por %p584_p5, %p583_p4 }
   0xe   :  { %p586_p7 = pnand %p585_p6, %p579_p3 }
  0x10   :  { %589 = shalt.err (!%p586_p7)
}
  0x11   :  { %s663_s28 = smov 256   ;;  %s664_s29 = smov 16  }
  0x12   :  { %36 = dma.hbm_to_vmem [thread:$0]  %s776_s1, 4096, %s31_s19, [#allocation6], %s663_s28, %s663_s28, %s664_s29  }
  0x13   :  { %s665_s7 = smov [#allocation2]   ;;  %s590_s11 = scalar_lea.hbm %s775_s0, 896 }
  0x14   :  { %s18_s8 = sshll.u32 %s665_s7, 4  ;;  %p591_p8 = scmp.ne.s32.totalorder %s775_s0, %s590_s11  ;;  %s19_s8 = int_to_ptr.vmem [resolvable:$true] %s18_s8 }
  0x15   :  { %p594_p9 = scmp.lt.u32.totalorder %s590_s11, %s775_s0 }
  0x17   :  { %p596_p10 = pnand %p594_p9, %p591_p8 }
  0x19   :  { %599 = shalt.err (!%p596_p10)
}
  0x1a   :  { %s600_s16 = scalar_lea.vmem %s19_s8, 896  ;;  %p605_p12 = scmp.lt.s32.totalorder %s19_s8, %s19_s8 }
  0x1b   :  { %p601_p11 = scmp.ne.s32.totalorder %s19_s8, %s600_s16  ;;  %p606_p13 = scmp.lt.s32.totalorder %s600_s16, %s600_s16 }
  0x1d   :  { %p607_p0 = por %p606_p13, %p605_p12 }
  0x1f   :  { %p608_p1 = pnand %p607_p0, %p601_p11 }
  0x21   :  { %611 = shalt.err (!%p608_p1)
}
  0x22   :  { %s666_s1 = smov 128   ;;  %s667_s17 = smov 8  }
  0x23   :  { %24 = dma.hbm_to_vmem [thread:$0]  %s775_s0, 896, %s19_s8, [#allocation3], %s666_s1, %s666_s1, %s667_s17  }
  0x24   :  { %s668_s20 = smov [#allocation7]   ;;  %s612_s24 = scalar_lea.hbm %s778_s3, 8192 }
  0x25   :  { %s44_s21 = sshll.u32 %s668_s20, 4  ;;  %p613_p2 = scmp.ne.s32.totalorder %s778_s3, %s612_s24  ;;  %s45_s21 = int_to_ptr.vmem [resolvable:$true] %s44_s21 }
  0x26   :  { %p616_p3 = scmp.lt.u32.totalorder %s612_s24, %s778_s3 }
  0x28   :  { %p618_p4 = pnand %p616_p3, %p613_p2 }
  0x2a   :  { %621 = shalt.err (!%p618_p4)
}
  0x2b   :  { %s622_s6 = scalar_lea.vmem %s45_s21, 8192  ;;  %p627_p6 = scmp.lt.s32.totalorder %s45_s21, %s45_s21 }
  0x2c   :  { %p623_p5 = scmp.ne.s32.totalorder %s45_s21, %s622_s6  ;;  %p628_p7 = scmp.lt.s32.totalorder %s622_s6, %s622_s6 }
  0x2e   :  { %p629_p8 = por %p628_p7, %p627_p6 }
  0x30   :  { %p630_p9 = pnand %p629_p8, %p623_p5 }
  0x32   :  { %633 = shalt.err (!%p630_p9)
}
  0x33   :  { %50 = dma.hbm_to_vmem [thread:$0]  %s778_s3, 8192, %s45_s21, [#allocation6], %s663_s28, %s663_s28, %s664_s29  }
  0x34   :  { %656 = dma.done.wait [#allocation3], 896  }
  0x35   :  { %657 = vsyncadd [#allocation3], 4294966400 }
  0x36   :  { %658 = dma.done.wait [#allocation6], 12288  }
  0x37   :  { %659 = vsyncadd [#allocation6], 4294955008  ;;  %v669_v0 = vmov 0.0   ;;  %v63_v1 = vld [vmem:[#allocation5 + $0x8] sm:$0xff]  ;;  %v65_v2 = vld [vmem:[#allocation5 + $0x18] sm:$0xff] }
  0x38   :  { %253 = vmatprep.mubr.f32.mxu0 %v669_v0  ;;  %v62_v3 = vld [vmem:[#allocation5] sm:$0xff]  ;;  %v463_v4 = vpack.c.bf16 %v65_v2, %v63_v1  ;;  %v64_v5 = vld [vmem:[#allocation5 + $0x10] sm:$0xff]  ;;  %v67_v6 = vld [vmem:[#allocation5 + $0x28] sm:$0xff] }
  0x39   :  { %v69_v7 = vld [vmem:[#allocation5 + $0x38] sm:$0xff]  ;;  %v465_v8 = vpack.c.bf16 %v64_v5, %v62_v3  ;;  %v66_v10 = vld [vmem:[#allocation5 + $0x20] sm:$0xff]  ;;  %v68_v11 = vld [vmem:[#allocation5 + $0x30] sm:$0xff] }
  0x3a   :  { %v467_v9 = vpack.c.bf16 %v69_v7, %v67_v6  ;;  %v71_v12 = vld [vmem:[#allocation5 + $0x48] sm:$0xff]  ;;  %464 = vmatprep.subr.bf16.mxu0 %v463_v4  ;;  %v73_v13 = vld [vmem:[#allocation5 + $0x58] sm:$0xff]  ;;  %v469_v14 = vpack.c.bf16 %v68_v11, %v66_v10  ;;  %v70_v16 = vld [vmem:[#allocation5 + $0x40] sm:$0xff] }
  0x3b   :  { %466 = vmatpush1.bf16.msra.mxu0 %v465_v8  ;;  %v471_v15 = vpack.c.bf16 %v73_v13, %v71_v12  ;;  %v72_v17 = vld [vmem:[#allocation5 + $0x50] sm:$0xff]  ;;  %v75_v18 = vld [vmem:[#allocation5 + $0x68] sm:$0xff]  ;;  %v77_v19 = vld [vmem:[#allocation5 + $0x78] sm:$0xff] }
  0x3c   :  { %468 = vmatprep.subr.bf16.mxu0 %v467_v9  ;;  %v473_v20 = vpack.c.bf16 %v72_v17, %v70_v16  ;;  %v475_v21 = vpack.c.bf16 %v77_v19, %v75_v18  ;;  %v74_v22 = vld [vmem:[#allocation5 + $0x60] sm:$0xff]  ;;  %v76_v23 = vld [vmem:[#allocation5 + $0x70] sm:$0xff]  ;;  %v79_v24 = vld [vmem:[#allocation5 + $0x88] sm:$0xff] }
  0x3d   :  { %v81_v25 = vld [vmem:[#allocation5 + $0x98] sm:$0xff]  ;;  %v78_v26 = vld [vmem:[#allocation5 + $0x80] sm:$0xff]  ;;  %v477_v27 = vpack.c.bf16 %v76_v23, %v74_v22  ;;  %v80_v28 = vld [vmem:[#allocation5 + $0x90] sm:$0xff] }
  0x3e   :  { %v83_v29 = vld [vmem:[#allocation5 + $0xa8] sm:$0xff]  ;;  %v85_v30 = vld [vmem:[#allocation5 + $0xb8] sm:$0xff]  ;;  %v479_v31 = vpack.c.bf16 %v81_v25, %v79_v24  ;;  %v94_v34 = vld [vmem:[#allocation7] sm:$0xff]  ;;  %v481_v44 = vpack.c.bf16 %v80_v28, %v78_v26 }
  0x3f   :  { %470 = vmatpush1.bf16.msra.mxu0 %v469_v14  ;;  %v95_v32 = vld [vmem:[#allocation7 + $0x8] sm:$0xff]  ;;  %v97_v33 = vld [vmem:[#allocation7 + $0x18] sm:$0xff]  ;;  %v96_v36 = vld [vmem:[#allocation7 + $0x10] sm:$0xff]  ;;  %v483_v46 = vpack.c.bf16 %v85_v30, %v83_v29 }
  0x40   :  { %472 = vmatprep.subr.bf16.mxu0 %v471_v15  ;;  %v495_v35 = vpack.c.bf16 %v97_v33, %v95_v32  ;;  %v99_v37 = vld [vmem:[#allocation7 + $0x28] sm:$0xff]  ;;  %v101_v38 = vld [vmem:[#allocation7 + $0x38] sm:$0xff]  ;;  %v497_v39 = vpack.c.bf16 %v96_v36, %v94_v34  ;;  %v98_v41 = vld [vmem:[#allocation7 + $0x20] sm:$0xff] }
  0x41   :  { %v499_v40 = vpack.c.bf16 %v101_v38, %v99_v37  ;;  %v100_v42 = vld [vmem:[#allocation7 + $0x30] sm:$0xff]  ;;  %v103_v43 = vld [vmem:[#allocation7 + $0x48] sm:$0xff]  ;;  %v105_v45 = vld [vmem:[#allocation7 + $0x58] sm:$0xff] }
  0x42   :  { %496 = vmatprep.subr.bf16.mxu1 %v495_v35  ;;  %v82_v47 = vld [vmem:[#allocation5 + $0xa0] sm:$0xff]  ;;  %v84_v48 = vld [vmem:[#allocation5 + $0xb0] sm:$0xff]  ;;  %v87_v49 = vld [vmem:[#allocation5 + $0xc8] sm:$0xff]  ;;  %v501_v50 = vpack.c.bf16 %v100_v42, %v98_v41  ;;  %v503_v52 = vpack.c.bf16 %v105_v45, %v103_v43 }
  0x43   :  { %474 = vmatpush1.bf16.msra.mxu0 %v473_v20  ;;  %498 = vmatpush1.bf16.msra.mxu1 %v497_v39  ;;  %v89_v51 = vld [vmem:[#allocation5 + $0xd8] sm:$0xff]  ;;  %v102_v53 = vld [vmem:[#allocation7 + $0x40] sm:$0xff]  ;;  %v104_v54 = vld [vmem:[#allocation7 + $0x50] sm:$0xff]  ;;  %v485_v57 = vpack.c.bf16 %v84_v48, %v82_v47 }
  0x44   :  { %476 = vmatprep.subr.bf16.mxu0 %v475_v21  ;;  %500 = vmatprep.subr.bf16.mxu1 %v499_v40  ;;  %v107_v55 = vld [vmem:[#allocation7 + $0x68] sm:$0xff]  ;;  %v109_v56 = vld [vmem:[#allocation7 + $0x78] sm:$0xff]  ;;  %v487_v58 = vpack.c.bf16 %v89_v51, %v87_v49  ;;  %v86_v59 = vld [vmem:[#allocation5 + $0xc0] sm:$0xff]  ;;  %v505_v62 = vpack.c.bf16 %v104_v54, %v102_v53 }
  0x45   :  { %v88_v60 = vld [vmem:[#allocation5 + $0xd0] sm:$0xff]  ;;  %v91_v61 = vld [vmem:[#allocation5 + $0xe8] sm:$0xff]  ;;  %v93_v63 = vld [vmem:[#allocation5 + $0xf8] sm:$0xff]  ;;  %v507_v1 = vpack.c.bf16 %v109_v56, %v107_v55 }
  0x46   :  { %v106_v2 = vld [vmem:[#allocation7 + $0x60] sm:$0xff]  ;;  %v108_v3 = vld [vmem:[#allocation7 + $0x70] sm:$0xff]  ;;  %v111_v4 = vld [vmem:[#allocation7 + $0x88] sm:$0xff]  ;;  %v489_v6 = vpack.c.bf16 %v88_v60, %v86_v59  ;;  %v491_v7 = vpack.c.bf16 %v93_v63, %v91_v61 }
  0x47   :  { %478 = vmatpush1.bf16.msra.mxu0 %v477_v27  ;;  %502 = vmatpush1.bf16.msra.mxu1 %v501_v50  ;;  %v113_v5 = vld [vmem:[#allocation7 + $0x98] sm:$0xff]  ;;  %v90_v8 = vld [vmem:[#allocation5 + $0xe0] sm:$0xff]  ;;  %v92_v9 = vld [vmem:[#allocation5 + $0xf0] sm:$0xff]  ;;  %v509_v10 = vpack.c.bf16 %v108_v3, %v106_v2 }
  0x48   :  { %480 = vmatprep.subr.bf16.mxu0 %v479_v31  ;;  %504 = vmatprep.subr.bf16.mxu1 %v503_v52  ;;  %v511_v11 = vpack.c.bf16 %v113_v5, %v111_v4  ;;  %v110_v12 = vld [vmem:[#allocation7 + $0x80] sm:$0xff]  ;;  %v112_v13 = vld [vmem:[#allocation7 + $0x90] sm:$0xff]  ;;  %v115_v14 = vld [vmem:[#allocation7 + $0xa8] sm:$0xff]  ;;  %v493_v16 = vpack.c.bf16 %v92_v9, %v90_v8 }
  0x49   :  { %v117_v15 = vld [vmem:[#allocation7 + $0xb8] sm:$0xff]  ;;  %v513_v17 = vpack.c.bf16 %v112_v13, %v110_v12  ;;  %v114_v19 = vld [vmem:[#allocation7 + $0xa0] sm:$0xff]  ;;  %v116_v20 = vld [vmem:[#allocation7 + $0xb0] sm:$0xff] }
  0x4a   :  { %v515_v18 = vpack.c.bf16 %v117_v15, %v115_v14  ;;  %v119_v21 = vld [vmem:[#allocation7 + $0xc8] sm:$0xff]  ;;  %v121_v22 = vld [vmem:[#allocation7 + $0xd8] sm:$0xff]  ;;  %v517_v24 = vpack.c.bf16 %v116_v20, %v114_v19  ;;  %v118_v26 = vld [vmem:[#allocation7 + $0xc0] sm:$0xff] }
  0x4b   :  { %482 = vmatpush1.bf16.msra.mxu0 %v481_v44  ;;  %506 = vmatpush1.bf16.msra.mxu1 %v505_v62  ;;  %v182_v23 = vld [vmem:[#allocation2] sm:$0xff]  ;;  %v519_v25 = vpack.c.bf16 %v121_v22, %v119_v21  ;;  %v120_v27 = vld [vmem:[#allocation7 + $0xd0] sm:$0xff]  ;;  %v125_v29 = vld [vmem:[#allocation7 + $0xf8] sm:$0xff] }
  0x4c   :  { %484 = vmatprep.subr.bf16.mxu0 %v483_v46  ;;  %508 = vmatprep.subr.bf16.mxu1 %v507_v1  ;;  %v123_v28 = vld [vmem:[#allocation7 + $0xe8] sm:$0xff]  ;;  %v183_v30 = vld [vmem:[#allocation2 + $0x8] sm:$0xff]  ;;  %v521_v31 = vpack.c.bf16 %v120_v27, %v118_v26  ;;  %v122_v33 = vld [vmem:[#allocation7 + $0xe0] sm:$0xff] }
  0x4d   :  { %v523_v32 = vpack.c.bf16 %v125_v29, %v123_v28  ;;  %v124_v34 = vld [vmem:[#allocation7 + $0xf0] sm:$0xff]  ;;  %v127_v35 = vld [vmem:[#allocation7 + $0x108] sm:$0xff]  ;;  %v129_v36 = vld [vmem:[#allocation7 + $0x118] sm:$0xff] }
  0x4e   :  { %v184_v37 = vld [vmem:[#allocation2 + $0x10] sm:$0xff]  ;;  %v525_v38 = vpack.c.bf16 %v124_v34, %v122_v33  ;;  %v527_v39 = vpack.c.bf16 %v129_v36, %v127_v35  ;;  %v126_v40 = vld [vmem:[#allocation7 + $0x100] sm:$0xff]  ;;  %v128_v41 = vld [vmem:[#allocation7 + $0x110] sm:$0xff] }
  0x4f   :  { %486 = vmatpush1.bf16.msra.mxu0 %v485_v57  ;;  %510 = vmatpush1.bf16.msra.mxu1 %v509_v10  ;;  %v131_v42 = vld [vmem:[#allocation7 + $0x128] sm:$0xff]  ;;  %v133_v43 = vld [vmem:[#allocation7 + $0x138] sm:$0xff]  ;;  %v185_v44 = vld [vmem:[#allocation2 + $0x18] sm:$0xff]  ;;  %v529_v45 = vpack.c.bf16 %v128_v41, %v126_v40 }
  0x50   :  { %488 = vmatprep.subr.bf16.mxu0 %v487_v58  ;;  %512 = vmatprep.subr.bf16.mxu1 %v511_v11  ;;  %v531_v46 = vpack.c.bf16 %v133_v43, %v131_v42  ;;  %v130_v47 = vld [vmem:[#allocation7 + $0x120] sm:$0xff]  ;;  %v132_v48 = vld [vmem:[#allocation7 + $0x130] sm:$0xff]  ;;  %v135_v49 = vld [vmem:[#allocation7 + $0x148] sm:$0xff] }
  0x51   :  { %v137_v50 = vld [vmem:[#allocation7 + $0x158] sm:$0xff]  ;;  %v186_v51 = vld [vmem:[#allocation2 + $0x20] sm:$0xff]  ;;  %v533_v52 = vpack.c.bf16 %v132_v48, %v130_v47  ;;  %v134_v54 = vld [vmem:[#allocation7 + $0x140] sm:$0xff] }
  0x52   :  { %v535_v53 = vpack.c.bf16 %v137_v50, %v135_v49  ;;  %v136_v55 = vld [vmem:[#allocation7 + $0x150] sm:$0xff]  ;;  %v139_v56 = vld [vmem:[#allocation7 + $0x168] sm:$0xff]  ;;  %v141_v57 = vld [vmem:[#allocation7 + $0x178] sm:$0xff] }
  0x53   :  { %490 = vmatpush1.bf16.msra.mxu0 %v489_v6  ;;  %514 = vmatpush1.bf16.msra.mxu1 %v513_v17  ;;  %v187_v58 = vld [vmem:[#allocation2 + $0x28] sm:$0xff]  ;;  %v537_v59 = vpack.c.bf16 %v136_v55, %v134_v54  ;;  %v539_v60 = vpack.c.bf16 %v141_v57, %v139_v56  ;;  %v138_v61 = vld [vmem:[#allocation7 + $0x160] sm:$0xff]  ;;  %v143_v63 = vld [vmem:[#allocation7 + $0x188] sm:$0xff] }
  0x54   :  { %492 = vmatprep.subr.bf16.mxu0 %v491_v7  ;;  %516 = vmatprep.subr.bf16.mxu1 %v515_v18  ;;  %v140_v62 = vld [vmem:[#allocation7 + $0x170] sm:$0xff]  ;;  %v145_v1 = vld [vmem:[#allocation7 + $0x198] sm:$0xff]  ;;  %v142_v5 = vld [vmem:[#allocation7 + $0x180] sm:$0xff] }
  0x55   :  { %v188_v2 = vld [vmem:[#allocation2 + $0x30] sm:$0xff]  ;;  %v541_v3 = vpack.c.bf16 %v140_v62, %v138_v61  ;;  %v543_v4 = vpack.c.bf16 %v145_v1, %v143_v63  ;;  %v144_v6 = vld [vmem:[#allocation7 + $0x190] sm:$0xff]  ;;  %v147_v7 = vld [vmem:[#allocation7 + $0x1a8] sm:$0xff] }
  0x56   :  { %v149_v8 = vld [vmem:[#allocation7 + $0x1b8] sm:$0xff]  ;;  %v545_v9 = vpack.c.bf16 %v144_v6, %v142_v5  ;;  %v146_v11 = vld [vmem:[#allocation7 + $0x1a0] sm:$0xff]  ;;  %v148_v12 = vld [vmem:[#allocation7 + $0x1b0] sm:$0xff] }
  0x57   :  { %494 = vmatpush1.bf16.msra.mxu0 %v493_v16  ;;  %518 = vmatpush1.bf16.msra.mxu1 %v517_v24  ;;  %v547_v10 = vpack.c.bf16 %v149_v8, %v147_v7  ;;  %v151_v13 = vld [vmem:[#allocation7 + $0x1c8] sm:$0xff]  ;;  %v153_v14 = vld [vmem:[#allocation7 + $0x1d8] sm:$0xff]  ;;  %v150_v16 = vld [vmem:[#allocation7 + $0x1c0] sm:$0xff] }
  0x58   :  { %520 = vmatprep.subr.bf16.mxu1 %v519_v25  ;;  %v551_v15 = vpack.c.bf16 %v153_v14, %v151_v13  ;;  %v152_v17 = vld [vmem:[#allocation7 + $0x1d0] sm:$0xff]  ;;  %v155_v19 = vld [vmem:[#allocation7 + $0x1e8] sm:$0xff]  ;;  %v157_v20 = vld [vmem:[#allocation7 + $0x1f8] sm:$0xff]  ;;  %v160_v25 = vlaneseq }
  0x59   :  { %v553_v18 = vpack.c.bf16 %v152_v17, %v150_v16  ;;  %v555_v21 = vpack.c.bf16 %v157_v20, %v155_v19  ;;  %v154_v22 = vld [vmem:[#allocation7 + $0x1e0] sm:$0xff]  ;;  %v158_v28 = vld [vmem:[%s777_s2] sm:$0x3] }
  0x5a   :  { %254 = vmatmul.mubr.f32.vlgmr.msra.gmra.mrb[0].mxu0 %v182_v23  ;;  %v156_v23 = vld [vmem:[#allocation7 + $0x1f0] sm:$0xff]  ;;  %v750_v26 = vshrl.u32 %v160_v25, 7 }
  0x5b   :  { %259 = vmatprep.mubr.f32.mxu0 %v669_v0  ;;  %522 = vmatpush1.bf16.msra.mxu1 %v521_v31  ;;  %v557_v24 = vpack.c.bf16 %v156_v23, %v154_v22 }
  0x5c   :  { %524 = vmatprep.subr.bf16.mxu1 %v523_v32  ;;  %v162_v27 = vsub.s32 0, %v750_v26  ;;  %v166_v29 = vsub.s32 1, %v750_v26 }
  0x5e   :  { %260 = vmatmul.mubr.f32.gmra.mrb[2].mxu0 %v183_v30  ;;  %v163_v30 = vrot.slane %v158_v28, %v162_v27  ;;  %v167_v31 = vrot.slane %v158_v28, %v166_v29 }
  0x5f   :  { %265 = vmatprep.mubr.f32.mxu0 %v669_v0  ;;  %526 = vmatpush1.bf16.msra.mxu1 %v525_v38 }
  0x60   :  { %528 = vmatprep.subr.bf16.mxu1 %v527_v39 }
  0x62   :  { %266 = vmatmul.mubr.f32.gmra.mrb[4].mxu0 %v184_v37 }
  0x63   :  { %271 = vmatprep.mubr.f32.mxu0 %v669_v0  ;;  %530 = vmatpush1.bf16.msra.mxu1 %v529_v45 }
  0x64   :  { %532 = vmatprep.subr.bf16.mxu1 %v531_v46 }
  0x66   :  { %272 = vmatmul.mubr.f32.gmra.mrb[6].mxu0 %v185_v44 }
  0x67   :  { %277 = vmatprep.mubr.f32.mxu0 %v669_v0  ;;  %534 = vmatpush1.bf16.msra.mxu1 %v533_v52 }
  0x68   :  { %536 = vmatprep.subr.bf16.mxu1 %v535_v53 }
  0x6a   :  { %278 = vmatmul.mubr.f32.gmra.mrb[8].mxu0 %v186_v51 }
  0x6b   :  { %283 = vmatprep.mubr.f32.mxu0 %v669_v0  ;;  %538 = vmatpush1.bf16.msra.mxu1 %v537_v59 }
  0x6c   :  { %540 = vmatprep.subr.bf16.mxu1 %v539_v60 }
  0x6e   :  { %284 = vmatmul.mubr.f32.gmra.mrb[10].mxu0 %v187_v58 }
  0x6f   :  { %289 = vmatprep.mubr.f32.mxu0 %v669_v0  ;;  %542 = vmatpush1.bf16.msra.mxu1 %v541_v3  ;;  %v549_v0 = vpack.c.bf16 %v148_v12, %v146_v11  ;;  %v170_v11 = vld [vmem:[%s779_s4] sm:$0x3]  ;;  %s670_s4 = smov [#allocation8]  }
  0x70   :  { %544 = vmatprep.subr.bf16.mxu1 %v543_v4  ;;  %v175_v12 = vrot.slane %v170_v11, %v162_v27  ;;  %v179_v13 = vrot.slane %v170_v11, %v166_v29  ;;  %s450_s10 = sshll.u32 %s670_s4, 4  ;;  %s451_s10 = int_to_ptr.vmem [resolvable:$true] %s450_s10 }
  0x71   :  { %s634_s11 = scalar_lea.vmem %s451_s10, 1792  ;;  %p639_p11 = scmp.lt.s32.totalorder %s451_s10, %s451_s10 }
  0x72   :  { %290 = vmatmul.mubr.f32.gmra.mrb[12].mxu0 %v188_v2  ;;  %p635_p10 = scmp.ne.s32.totalorder %s451_s10, %s634_s11  ;;  %p640_p12 = scmp.lt.s32.totalorder %s634_s11, %s634_s11 }
  0x73   :  { %546 = vmatpush1.bf16.msra.mxu1 %v545_v9 }
  0x74   :  { %548 = vmatprep.subr.bf16.mxu1 %v547_v10  ;;  %p641_p13 = por %p640_p12, %p639_p11 }
  0x76   :  { %p642_p0 = pnand %p641_p13, %p635_p10 }
  0x77   :  { %550 = vmatpush1.bf16.msra.mxu1 %v549_v0 }
  0x78   :  { %552 = vmatprep.subr.bf16.mxu1 %v551_v15 }
  0x7b   :  { %554 = vmatpush1.bf16.msra.mxu1 %v553_v18 }
  0x7c   :  { %556 = vmatprep.subr.bf16.mxu1 %v555_v21 }
  0x7f   :  { %558 = vmatpush1.bf16.msra.mxu1 %v557_v24 }
 0x12d   :  { %v255_v32 = vpop.f32.mrb[0].mxu0 }
 0x12e   :  { %v256_v33 = vadd.f32 %v255_v32, %v163_v30  ;;  %v257_v34 = vpop.f32.mrb[1].mxu0 }
 0x12f   :  { %v258_v35 = vadd.f32 %v257_v34, %v167_v31 }
 0x130   :  { %v296_v38 = vmax.f32 %v256_v33, 0.0 }
 0x131   :  { %v261_v36 = vpop.f32.mrb[2].mxu0  ;;  %v297_v37 = vmax.f32 %v258_v35, 0.0 }
 0x132   :  { %v262_v39 = vadd.f32 %v261_v36, %v163_v30  ;;  %v263_v40 = vpop.f32.mrb[3].mxu0 }
 0x133   :  { %v264_v41 = vadd.f32 %v263_v40, %v167_v31  ;;  %374 = vmatprep.mubr.f32.mxu1 %v297_v37 }
 0x134   :  { %375 = vmatmul.mubr.f32.vlgmr.msra.gmra.mrb[0].mxu1 %v296_v38  ;;  %v298_v44 = vmax.f32 %v262_v39, 0.0 }
 0x135   :  { %v299_v42 = vmax.f32 %v264_v41, 0.0  ;;  %v267_v43 = vpop.f32.mrb[4].mxu0 }
 0x136   :  { %v268_v45 = vadd.f32 %v267_v43, %v163_v30  ;;  %v269_v46 = vpop.f32.mrb[5].mxu0 }
 0x137   :  { %v270_v47 = vadd.f32 %v269_v46, %v167_v31  ;;  %380 = vmatprep.mubr.f32.mxu1 %v299_v42 }
 0x138   :  { %381 = vmatmul.mubr.f32.gmra.mrb[2].mxu1 %v298_v44  ;;  %v300_v50 = vmax.f32 %v268_v45, 0.0 }
 0x139   :  { %v301_v48 = vmax.f32 %v270_v47, 0.0  ;;  %v273_v49 = vpop.f32.mrb[6].mxu0 }
 0x13a   :  { %v274_v51 = vadd.f32 %v273_v49, %v163_v30  ;;  %v275_v52 = vpop.f32.mrb[7].mxu0 }
 0x13b   :  { %v276_v53 = vadd.f32 %v275_v52, %v167_v31  ;;  %386 = vmatprep.mubr.f32.mxu1 %v301_v48 }
 0x13c   :  { %387 = vmatmul.mubr.f32.gmra.mrb[4].mxu1 %v300_v50  ;;  %v302_v56 = vmax.f32 %v274_v51, 0.0 }
 0x13d   :  { %v303_v54 = vmax.f32 %v276_v53, 0.0  ;;  %v279_v55 = vpop.f32.mrb[8].mxu0 }
 0x13e   :  { %v280_v57 = vadd.f32 %v279_v55, %v163_v30  ;;  %v281_v58 = vpop.f32.mrb[9].mxu0 }
 0x13f   :  { %v282_v59 = vadd.f32 %v281_v58, %v167_v31  ;;  %392 = vmatprep.mubr.f32.mxu1 %v303_v54 }
 0x140   :  { %393 = vmatmul.mubr.f32.gmra.mrb[6].mxu1 %v302_v56  ;;  %v304_v62 = vmax.f32 %v280_v57, 0.0 }
 0x141   :  { %v305_v60 = vmax.f32 %v282_v59, 0.0  ;;  %v285_v61 = vpop.f32.mrb[10].mxu0 }
 0x142   :  { %v286_v63 = vadd.f32 %v285_v61, %v163_v30  ;;  %v287_v1 = vpop.f32.mrb[11].mxu0 }
 0x143   :  { %v288_v2 = vadd.f32 %v287_v1, %v167_v31  ;;  %398 = vmatprep.mubr.f32.mxu1 %v305_v60 }
 0x144   :  { %399 = vmatmul.mubr.f32.gmra.mrb[8].mxu1 %v304_v62  ;;  %v306_v5 = vmax.f32 %v286_v63, 0.0 }
 0x145   :  { %v307_v3 = vmax.f32 %v288_v2, 0.0  ;;  %v291_v4 = vpop.f32.mrb[12].mxu0 }
 0x146   :  { %v292_v6 = vadd.f32 %v291_v4, %v163_v30  ;;  %v293_v7 = vpop.f32.mrb[13].mxu0 }
 0x147   :  { %v294_v8 = vadd.f32 %v293_v7, %v167_v31  ;;  %404 = vmatprep.mubr.f32.mxu1 %v307_v3 }
 0x148   :  { %405 = vmatmul.mubr.f32.gmra.mrb[10].mxu1 %v306_v5  ;;  %v308_v10 = vmax.f32 %v292_v6, 0.0 }
 0x149   :  { %v309_v9 = vmax.f32 %v294_v8, 0.0 }
 0x14b   :  { %410 = vmatprep.mubr.f32.mxu1 %v309_v9 }
 0x14c   :  { %411 = vmatmul.mubr.f32.gmra.mrb[12].mxu1 %v308_v10 }
 0x207   :  { %v376_v14 = vpop.f32.mrb[0].mxu1 }
 0x208   :  { %v377_v0 = vadd.f32 %v376_v14, %v175_v12  ;;  %v378_v15 = vpop.f32.mrb[1].mxu1 }
 0x209   :  { %v379_v16 = vadd.f32 %v378_v15, %v179_v13 }
 0x20a   :  { %v417_v17 = vmax.f32 %v377_v0, 0.0 }
 0x20b   :  { %v418_v18 = vmax.f32 %v379_v16, 0.0  ;;  %v382_v19 = vpop.f32.mrb[2].mxu1 }
 0x20c   :  { %431 = vst [vmem:[#allocation8] sm:$0xff] %v417_v17  ;;  %v383_v20 = vadd.f32 %v382_v19, %v175_v12  ;;  %v384_v21 = vpop.f32.mrb[3].mxu1 }
 0x20d   :  { %432 = vst [vmem:[#allocation8 + $0x8] sm:$0xff] %v418_v18  ;;  %v385_v22 = vadd.f32 %v384_v21, %v179_v13 }
 0x20e   :  { %v419_v23 = vmax.f32 %v383_v20, 0.0 }
 0x20f   :  { %v420_v24 = vmax.f32 %v385_v22, 0.0  ;;  %v388_v25 = vpop.f32.mrb[4].mxu1 }
 0x210   :  { %433 = vst [vmem:[#allocation8 + $0x10] sm:$0xff] %v419_v23  ;;  %v389_v26 = vadd.f32 %v388_v25, %v175_v12  ;;  %v390_v28 = vpop.f32.mrb[5].mxu1 }
 0x211   :  { %434 = vst [vmem:[#allocation8 + $0x18] sm:$0xff] %v420_v24  ;;  %v391_v27 = vadd.f32 %v390_v28, %v179_v13 }
 0x212   :  { %v421_v29 = vmax.f32 %v389_v26, 0.0 }
 0x213   :  { %v422_v30 = vmax.f32 %v391_v27, 0.0  ;;  %v394_v31 = vpop.f32.mrb[6].mxu1 }
 0x214   :  { %435 = vst [vmem:[#allocation8 + $0x20] sm:$0xff] %v421_v29  ;;  %v395_v32 = vadd.f32 %v394_v31, %v175_v12  ;;  %v396_v33 = vpop.f32.mrb[7].mxu1 }
 0x215   :  { %436 = vst [vmem:[#allocation8 + $0x28] sm:$0xff] %v422_v30  ;;  %v397_v34 = vadd.f32 %v396_v33, %v179_v13 }
 0x216   :  { %v423_v35 = vmax.f32 %v395_v32, 0.0 }
 0x217   :  { %v424_v36 = vmax.f32 %v397_v34, 0.0  ;;  %v400_v37 = vpop.f32.mrb[8].mxu1 }
 0x218   :  { %437 = vst [vmem:[#allocation8 + $0x30] sm:$0xff] %v423_v35  ;;  %v401_v38 = vadd.f32 %v400_v37, %v175_v12  ;;  %v402_v39 = vpop.f32.mrb[9].mxu1 }
 0x219   :  { %438 = vst [vmem:[#allocation8 + $0x38] sm:$0xff] %v424_v36  ;;  %v403_v40 = vadd.f32 %v402_v39, %v179_v13 }
 0x21a   :  { %v425_v41 = vmax.f32 %v401_v38, 0.0 }
 0x21b   :  { %v426_v42 = vmax.f32 %v403_v40, 0.0  ;;  %v406_v43 = vpop.f32.mrb[10].mxu1 }
 0x21c   :  { %439 = vst [vmem:[#allocation8 + $0x40] sm:$0xff] %v425_v41  ;;  %v407_v44 = vadd.f32 %v406_v43, %v175_v12  ;;  %v408_v45 = vpop.f32.mrb[11].mxu1 }
 0x21d   :  { %440 = vst [vmem:[#allocation8 + $0x48] sm:$0xff] %v426_v42  ;;  %v409_v46 = vadd.f32 %v408_v45, %v179_v13 }
 0x21e   :  { %v427_v47 = vmax.f32 %v407_v44, 0.0 }
 0x21f   :  { %v428_v48 = vmax.f32 %v409_v46, 0.0  ;;  %v412_v49 = vpop.f32.mrb[12].mxu1 }
 0x220   :  { %441 = vst [vmem:[#allocation8 + $0x50] sm:$0xff] %v427_v47  ;;  %v413_v50 = vadd.f32 %v412_v49, %v175_v12  ;;  %v414_v51 = vpop.f32.mrb[13].mxu1 }
 0x221   :  { %442 = vst [vmem:[#allocation8 + $0x58] sm:$0xff] %v428_v48  ;;  %v415_v52 = vadd.f32 %v414_v51, %v179_v13 }
 0x222   :  { %v429_v53 = vmax.f32 %v413_v50, 0.0 }
 0x223   :  { %v430_v54 = vmax.f32 %v415_v52, 0.0 }
 0x224   :  { %443 = vst [vmem:[#allocation8 + $0x60] sm:$0xff] %v429_v53 }
 0x225   :  { %444 = vst [vmem:[#allocation8 + $0x68] sm:$0xff] %v430_v54 }
 0x226   :  { %645 = shalt.err (!%p642_p0)
}
 0x227   :  { %s646_s14 = scalar_lea.hbm %s780_s5, 1792 }
 0x228   :  { %p647_p1 = scmp.ne.s32.totalorder %s780_s5, %s646_s14  ;;  %p650_p2 = scmp.lt.u32.totalorder %s646_s14, %s780_s5 }
 0x22a   :  { %p652_p3 = pnand %p650_p2, %p647_p1 }
 0x22c   :  { %655 = shalt.err (!%p652_p3)
}
 0x22d   :  { %456 = dma.vmem_to_hbm [thread:$0]  %s451_s10, 1792, %s780_s5, [#allocation4], %s663_s28, %s663_s28, %s664_s29  }
 0x22e   :  { %660 = dma.done.wait [#allocation4], 1792  }
 0x22f   :  { %661 = vsyncadd [#allocation4], 4294965504 }
 0x230   :  { %460 = vsyncpa [#allocation3], 1 }
 0x231   :  { %461 = vsyncpa [#allocation6], 1 }
 0x232   :  { %462 = vsyncpa [#allocation4], 1 }

</bundles_post_ra>
